<compile_context>
chip_gen: v7x
topology: tpu7x:2x2x1
jax: 0.10.0
libtpu: 0.0.40
codegen_flags: <defaults>
</compile_context>

<pallas_src>
import jax
import jax.numpy as jnp
from jax.experimental import pallas as pl
from jax.experimental.pallas import tpu as pltpu

BN_EPS = 1e-5     # nn.BatchNorm1d default eps
L2_EPS = 1e-12    # F.normalize default eps


def head_kernel(x_ref, ss_ref, out_ref):
    """NB batch rows per grid step.

    x_ref:   (NB, C, HW)  backbone feature map slice (C on sublanes, HW on lanes)
    ss_ref:  (2, C)       folded BN params: row 0 = scale, row 1 = shift
    out_ref: (NB, C)      L2-normalized bottleneck features (lane-dense on C)
    """
    # AdaptiveAvgPool2d(1) == mean over all spatial positions (lane axis).
    # dtype=f32 keeps accumulation in f32 and lets a bf16->f32 upcast fuse
    # into the reduce instead of materializing a full f32 copy of the block.
    pooled = jnp.mean(x_ref[...], axis=-1, dtype=jnp.float32)      # (NB, C)

    # Eval-mode BatchNorm1d, pre-folded: y = x*scale + shift.
    scale = ss_ref[0:1, :]                                         # (1, C)
    shift = ss_ref[1:2, :]                                         # (1, C)
    bn = pooled * scale + shift                                    # (NB, C)

    # F.normalize(bn, p=2, dim=1) = bn / max(||bn||, eps)
    #                             = bn * rsqrt(max(||bn||^2, eps^2))   (EUP)
    sq = jnp.sum(bn * bn, axis=-1, keepdims=True)                  # (NB, 1)
    inv_norm = jax.lax.rsqrt(jnp.maximum(sq, L2_EPS * L2_EPS))
    out_ref[...] = (bn * inv_norm).astype(out_ref.dtype)


def _vmem_capacity_bytes():
    """Per-TensorCore VMEM capacity; conservative fallback if unqueryable."""
    try:
        cap = getattr(pltpu.get_tpu_info(), "vmem_capacity_bytes", None)
        if cap:
            return int(cap)
    except Exception:
        pass
    return 64 << 20   # conservative: v7x per-TC VMEM


def _pick_block_n(N, C, HW, in_itemsize, vmem_cap):
    """Choose batch rows per grid step (NB), its VMEM need, and the budget."""
    # Budget = capacity minus headroom for compiler scratch / internal temps.
    budget = min(vmem_cap - (8 << 20), int(vmem_cap * 0.85))
    # Big blocks for a mem-bound kernel: ~16 rows on 64 MiB parts (v7x),
    # ~32 rows on 128 MiB parts (v5e/v6e).  (1 MiB/row at C=2048, HW=128, f32.)
    target = 16 if vmem_cap <= (64 << 20) else 32

    row_in = C * HW * in_itemsize                    # input rows (double-buffered)
    row_tmp = C * HW * 4 if in_itemsize < 4 else 0   # possible f32 upcast temp
    row_out = C * 4                                  # f32 output rows (double-buffered)
    fixed = 2 * (2 * C * 4) + (2 << 20)              # (2,C) params + slack

    def need(nb):
        return 2 * nb * row_in + nb * row_tmp + 2 * nb * row_out + fixed

    if N < 8:
        # Whole-batch block; equals the full array dim, so it is a legal tile.
        return N, need(N), budget

    nb = 8
    while nb + 8 <= target and need(nb + 8) <= budget:
        nb += 8
    # Keep the ("parallel",) batch grid at >= 2 steps whenever the batch
    # allows it so v7x's two TensorCores both get work (no effect on
    # single-TC v5e/v6e).
    if N >= 16:
        nb = min(nb, max(8, (N // 2) // 8 * 8))
    nb = min(nb, max(8, (N // 8) * 8))
    return nb, need(nb), budget


def memory_bank_head(feat_nchw, gamma, beta, running_mean, running_var):
    """Pooling + BN-neck + L2 normalize, fused in one Pallas kernel.

    feat_nchw: [N, C, H, W] (f32 or bf16) — output of the (untranslated) backbone.
    returns:   [N, C] float32 — L2-normalized bottleneck features.
    """
    N, C, H, W = feat_nchw.shape
    HW = H * W
    # Free, contiguous view: NCHW -> [N, C, HW].  No transpose, no HBM copy.
    x = feat_nchw.reshape(N, C, HW)

    # Fold BN (eval mode) into scale/shift on the host: one tiny (2, C) array.
    scale = gamma.astype(jnp.float32) * jax.lax.rsqrt(
        running_var.astype(jnp.float32) + BN_EPS)
    shift = beta.astype(jnp.float32) - running_mean.astype(jnp.float32) * scale
    scale_shift = jnp.stack([scale, shift], axis=0)        # (2, C)

    vmem_cap = _vmem_capacity_bytes()
    NB, need, budget = _pick_block_n(N, C, HW, jnp.dtype(x.dtype).itemsize,
                                     vmem_cap)
    # Partial edge block (N % NB != 0) is masked by Pallas; per-row math is
    # independent, so stale rows in the padded input never affect valid rows.
    grid = (pl.cdiv(N, NB),)

    # Raise the scoped-VMEM ceiling to the per-generation budget (it is a
    # limit, not an allocation).  ~54 MiB on v7x, ~108 MiB on v5e/v6e.
    vmem_limit = int(max(32 << 20, budget))

    out = pl.pallas_call(
        head_kernel,
        out_shape=jax.ShapeDtypeStruct((N, C), jnp.float32),
        grid_spec=pltpu.PrefetchScalarGridSpec(
            num_scalar_prefetch=0,
            grid=grid,
            in_specs=[
                pl.BlockSpec((NB, C, HW), lambda n: (n, 0, 0)),
                # Grid-invariant params: constant index_map keeps them VMEM-resident.
                pl.BlockSpec((2, C), lambda n: (0, 0)),
            ],
            out_specs=pl.BlockSpec((NB, C), lambda n: (n, 0)),
        ),
        compiler_params=pltpu.CompilerParams(
            dimension_semantics=("parallel",),
            vmem_limit_bytes=vmem_limit),
    )(x, scale_shift)
    return out


def ref_head(feat_nchw, gamma, beta, running_mean, running_var):
    """Plain-JAX reference mirroring the PyTorch eval forward."""
    pooled = feat_nchw.astype(jnp.float32).mean(axis=(2, 3))            # [N, C]
    bn = (pooled - running_mean) / jnp.sqrt(running_var + BN_EPS) * gamma + beta
    norm = jnp.maximum(jnp.linalg.norm(bn, axis=1, keepdims=True), L2_EPS)
    return bn / norm


if __name__ == "__main__":
    # Small, ResNet-like shapes: batch=16 (NB=8 -> 2-step parallel grid so the
    # v7x two-TC split is exercised), feature channels (out_dim)=32, 4x4
    # spatial map (real model: C=2048, spatial 16x8).
    N, C, H, W = 16, 32, 4, 4

    key = jax.random.PRNGKey(0)
    k_feat, k_g, k_b, k_m, k_v = jax.random.split(key, 5)

    # Stand-in for xx = resnet_conv(x) (backbone not re-implemented, see TODO).
    feat = jax.random.normal(k_feat, (N, C, H, W), dtype=jnp.float32)

    # Module init gives BN weight=1 / bias=0 and running stats (0, 1); use
    # perturbed values so the folded eval-mode BN math is actually exercised
    # (dropout is identity in eval; classifier unused, num_classes=0).
    gamma = 1.0 + 0.1 * jax.random.normal(k_g, (C,), jnp.float32)
    beta = 0.1 * jax.random.normal(k_b, (C,), jnp.float32)
    running_mean = 0.1 * jax.random.normal(k_m, (C,), jnp.float32)
    running_var = 1.0 + 0.5 * jax.random.uniform(k_v, (C,), jnp.float32)

    out = memory_bank_head(feat, gamma, beta, running_mean, running_var)
    out = jax.block_until_ready(out)

    ref = ref_head(feat, gamma, beta, running_mean, running_var)
    assert out.shape == (N, C)
    assert jnp.allclose(out, ref, atol=2e-5, rtol=2e-5), "mismatch vs reference"
    print("KERNEL_OK")
</pallas_src>

<mosaic_0001>
module attributes {stable_mosaic.version = 11 : i64} {
  func.func @head_kernel(%arg0: i32, %arg1: memref<8x32x16xf32, #tpu.memory_space<vmem>>, %arg2: memref<2x32xf32, #tpu.memory_space<vmem>>, %arg3: memref<8x32xf32, #tpu.memory_space<vmem>>) attributes {dimension_semantics = [#tpu.dimension_semantics<parallel>], iteration_bounds = array<i64: 2>, scalar_prefetch = 0 : i64, scratch_operands = 0 : i64, tpu.core_type = #tpu.core_type<tc>, window_params = [{transform_indices = @transform_0, window_bounds = array<i64: 8, 32, 16>}, {pipeline_mode = #tpu.pipeline_mode<synchronous>, transform_indices = @transform_1, window_bounds = array<i64: 2, 32>}, {transform_indices = @transform_2, window_bounds = array<i64: 8, 32>}]} {
    %c0 = arith.constant 0 : index
    %c0_0 = arith.constant 0 : index
    %c0_1 = arith.constant 0 : index
    %0 = vector.load %arg1[%c0, %c0_0, %c0_1] : memref<8x32x16xf32, #tpu.memory_space<vmem>>, vector<8x32x16xf32>
    %cst = arith.constant dense<0.000000e+00> : vector<8x32xf32>
    %1 = vector.multi_reduction <add>, %0, %cst [2] : vector<8x32x16xf32> to vector<8x32xf32>
    %cst_2 = arith.constant 1.600000e+01 : f32
    %2 = vector.broadcast %cst_2 : f32 to vector<8x32xf32>
    %3 = arith.divf %1, %2 : vector<8x32xf32>
    %c0_3 = arith.constant 0 : index
    %c0_4 = arith.constant 0 : index
    %4 = vector.load %arg2[%c0_3, %c0_4] : memref<2x32xf32, #tpu.memory_space<vmem>>, vector<1x32xf32>
    %c1 = arith.constant 1 : index
    %c0_5 = arith.constant 0 : index
    %5 = vector.load %arg2[%c1, %c0_5] : memref<2x32xf32, #tpu.memory_space<vmem>>, vector<1x32xf32>
    %6 = vector.broadcast %4 : vector<1x32xf32> to vector<8x32xf32>
    %7 = arith.mulf %3, %6 : vector<8x32xf32>
    %8 = vector.broadcast %5 : vector<1x32xf32> to vector<8x32xf32>
    %9 = arith.addf %7, %8 : vector<8x32xf32>
    %10 = arith.mulf %9, %9 : vector<8x32xf32>
    %cst_6 = arith.constant dense<0.000000e+00> : vector<8xf32>
    %11 = vector.multi_reduction <add>, %10, %cst_6 [1] : vector<8x32xf32> to vector<8xf32>
    %12 = vector.shape_cast %11 : vector<8xf32> to vector<8x1xf32>
    %cst_7 = arith.constant 1.000000e-24 : f32
    %13 = vector.broadcast %cst_7 : f32 to vector<8x1xf32>
    %14 = arith.maximumf %12, %13 : vector<8x1xf32>
    %15 = math.rsqrt %14 : vector<8x1xf32>
    %16 = vector.broadcast %15 : vector<8x1xf32> to vector<8x32xf32>
    %17 = arith.mulf %9, %16 : vector<8x32xf32>
    %c0_8 = arith.constant 0 : index
    %c0_9 = arith.constant 0 : index
    %18 = vector.load %arg3[%c0_8, %c0_9] : memref<8x32xf32, #tpu.memory_space<vmem>>, vector<8x32xf32>
    tpu.vector_store %arg3[%c0_8, %c0_9], %17 {strides = array<i32>} : memref<8x32xf32, #tpu.memory_space<vmem>>, vector<8x32xf32>,
    return
  }
  func.func @transform_0(%arg0: i32) -> (i32, i32, i32) {
    %c0_i32 = arith.constant 0 : i32
    %c0_i32_0 = arith.constant 0 : i32
    %c0_i32_1 = arith.constant 0 : i32
    return %arg0, %c0_i32, %c0_i32_0 : i32, i32, i32
  }
  func.func @transform_1(%arg0: i32) -> (i32, i32) {
    %c0_i32 = arith.constant 0 : i32
    %c0_i32_0 = arith.constant 0 : i32
    %c0_i32_1 = arith.constant 0 : i32
    return %c0_i32, %c0_i32_0 : i32, i32
  }
  func.func @transform_2(%arg0: i32) -> (i32, i32) {
    %c0_i32 = arith.constant 0 : i32
    %c0_i32_0 = arith.constant 0 : i32
    return %arg0, %c0_i32 : i32, i32
  }
}

</mosaic_0001>

<bundles_post_ra>
// kernel: tpu_custom_call.1
= control target key start
LH: loop header
LB: loop body
LE: loop exit
PB: predicated region body
PF: predicated region fallthrough
CT: control target
= control target key end

     0   :  { %7 = vsyncpa [#allocation3], 0  ;;  %s2024_s0 = inlined_call_operand.vmem [shape: f32[16,32,16], index: 0, kind: input, shape index: {}]   ;;  %s2025_s1 = inlined_call_operand.vmem [shape: f32[2,32], index: 1, kind: input, shape index: {}]   ;;  %s2026_s2 = inlined_call_operand.hbm [shape: f32[16,32], index: 2, kind: output, shape index: {}]  }
   0x1   :  { %9 = vsyncpa [#allocation3 + $0x1], 0  ;;  %s1339_s9 = smov 0   ;;  %s1341_s10 = smov 0  }
   0x2   :  { %s1343_s11 = smov 0   ;;  %s1345_s12 = smov 0  }
   0x3 LB: > { %s1360_s13 = sadd.s32 4294967295, %s1320_s12   ;;  %s1199_s14 = sadd.s32 4294967294, %s1320_s12   ;;  %s1320_s12 = sphi %s1345_s12, %s2056_s12   ;;  %s1316_s11 = sphi %s1343_s11, %s2055_s11   ;;  %s1312_s10 = sphi %s1341_s10, %s2054_s10   ;;  %s1308_s9 = sphi %s1339_s9, %s2053_s9  }
   0x4   : > { %s1364_s15 = sadd.s32 1, %s1320_s12   ;;  %s69_s16 = sadd.s32 1, %s1316_s11 }
   0x5   : > { %s66_s17 = ssub.s32 %s1320_s12, %s1364_s15  ;;  %p79_p0 = scmp.ne.s32.totalorder %s1316_s11, %s1312_s10 }
   0x6   : > { %p67_p1 = scmp.eq.s32.totalorder %s66_s17, 0  ;;  %p80_p2 = scmp.eq.s32.totalorder %s1360_s13, 1 }
   0x7   : > { %p85_p3 = scmp.ne.s32.totalorder %s1312_s10, %s1308_s9  ;;  %p86_p4 = scmp.eq.s32.totalorder %s1199_s14, 1 }
   0x8   : > { %s1375_s18 = scalar_select %p67_p1, %s1316_s11, %s69_s16  }
   0x9   : > { %p1377_p5 = por %p80_p2, %p79_p0  ;;  %p1381_p6 = por %p86_p4, %p85_p3 }
   0xa   : > { %p1202_p7 = scmp.ge.s32.totalorder %s1320_s12, 1  ;;  %p117_p8 = scmp.lt.s32.totalorder %s1320_s12, 3 }
   0xc   : > { %p118_p9 = pnand %p1202_p7, %p117_p8 }
   0xe   : > { %121 = sbr.rel (%p118_p9) target bundleno = 835 (0x343), region = 28 }
  0x15   : > { %s1204_s21 = sshll.u32 %s1360_s13, 3  ;;  %vm179_vm0 = vcmask 130048   ;;  %vm594_vm1 = vcmask 130112   ;;  %vm601_vm2 = vcmask 195712   ;;  %vm608_vm3 = vcmask 261312   ;;  %s137_s30 = sand.u32 1, %s1312_s10  }
  0x16   : > { %p141_p10 = scmp.lt.s32.totalorder %s1204_s21, 15  ;;  %vm743_vm4 = vcmask 1041409   ;;  %vm745_vm5 = vcmask 1042434   ;;  %vm747_vm6 = vcmask 1043459   ;;  %vm749_vm7 = vcmask 1044484   ;;  %s1941_s3 = sshll.u32 %s137_s30, 3 }
  0x17   : > { %vm751_vm8 = vcmask 1045509   ;;  %vm753_vm9 = vcmask 1046534   ;;  %vm755_vm10 = vcmask 1047559   ;;  %vm758_vm11 = vcmask 261120   ;;  %s1210_s4 = sshll.u32 %s1360_s13, 7  ;;  %s139_s5 = scalar_lea.vmem [#allocation2], %s1941_s3 }
  0x18   : > { %s2058_s21 = smov (!%p141_p10, %s1204_s21), 15  ;;  %s1140_s6 = sshll.u32 %s139_s5, 4  ;;  %s1980_s6 = int_to_ptr.vmem [resolvable:$true] %s1140_s6 }
  0x19   : > { %s1213_s22 = sshll.u32 %s2058_s21, 5  ;;  %s1978_s13 = scalar_lea.hbm %s2026_s2, %s1210_s4 }
  0x1a   : > { %s1391_s25 = scalar_lea.vmem %s2024_s0, %s1213_s22  ;;  %s1127_s14 = scalar_lea.sflag [#allocation3], %s137_s30 }
  0x1b   : > { %v149_v0 = vld [vmem:[%s1391_s25 + $0x10] sm:$0xff]  ;;  %v147_v1 = vld [vmem:[%s1391_s25] sm:$0xff]  ;;  %v150_v2 = vld [vmem:[%s1391_s25 + $0x18] sm:$0xff]  ;;  %s1258_s16 = scalar_lea.vmem %s1980_s6, 128  ;;  %s1323_s17 = smov [#allocation2]  }
  0x1c   : > { %v186_v3 = vsel %vm179_vm0, %v149_v0, 0.0  ;;  %v180_v4 = vsel %vm179_vm0, %v147_v1, 0.0  ;;  %v148_v5 = vld [vmem:[%s1391_s25 + $0x8] sm:$0xff]  ;;  %v189_v6 = vsel %vm179_vm0, %v150_v2, 0.0  ;;  %v151_v9 = vld [vmem:[%s1391_s25 + $0x20] sm:$0xff]  ;;  %v154_v12 = vld [vmem:[%s1391_s25 + $0x38] sm:$0xff]  ;;  %p1259_p11 = scmp.ne.s32.totalorder %s1980_s6, %s1258_s16 }
  0x1d   : > { %187 = vadd.xlane.f32.xlu1 %v186_v3  ;;  %181 = vadd.xlane.f32.xlu0 %v180_v4  ;;  %v183_v7 = vsel %vm179_vm0, %v148_v5, 0.0  ;;  %v152_v8 = vld [vmem:[%s1391_s25 + $0x28] sm:$0xff]  ;;  %v192_v11 = vsel %vm179_vm0, %v151_v9, 0.0  ;;  %v153_v13 = vld [vmem:[%s1391_s25 + $0x30] sm:$0xff]  ;;  %v201_v14 = vsel %vm179_vm0, %v154_v12, 0.0  ;;  %v155_v17 = vld [vmem:[%s1391_s25 + $0x40] sm:$0xff] }
  0x1e   : > { %v195_v10 = vsel %vm179_vm0, %v152_v8, 0.0  ;;  %v198_v15 = vsel %vm179_vm0, %v153_v13, 0.0  ;;  %v156_v16 = vld [vmem:[%s1391_s25 + $0x48] sm:$0xff]  ;;  %v204_v19 = vsel %vm179_vm0, %v155_v17, 0.0  ;;  %v158_v20 = vld [vmem:[%s1391_s25 + $0x58] sm:$0xff]  ;;  %v157_v21 = vld [vmem:[%s1391_s25 + $0x50] sm:$0xff]  ;;  %p1260_p12 = pnand %p1259_p11, %p1377_p5 }
  0x1f   : > { %v207_v18 = vsel %vm179_vm0, %v156_v16, 0.0  ;;  %v213_v22 = vsel %vm179_vm0, %v158_v20, 0.0  ;;  %v210_v23 = vsel %vm179_vm0, %v157_v21, 0.0  ;;  %v160_v24 = vld [vmem:[%s1391_s25 + $0x68] sm:$0xff]  ;;  %v159_v25 = vld [vmem:[%s1391_s25 + $0x60] sm:$0xff]  ;;  %v162_v28 = vld [vmem:[%s1391_s25 + $0x78] sm:$0xff] }
  0x20   : > { %v219_v26 = vsel %vm179_vm0, %v160_v24, 0.0  ;;  %v216_v27 = vsel %vm179_vm0, %v159_v25, 0.0  ;;  %v161_v29 = vld [vmem:[%s1391_s25 + $0x70] sm:$0xff]  ;;  %v225_v30 = vsel %vm179_vm0, %v162_v28, 0.0  ;;  %v164_v32 = vld [vmem:[%s1391_s25 + $0x88] sm:$0xff]  ;;  %v163_v33 = vld [vmem:[%s1391_s25 + $0x80] sm:$0xff]  ;;  %p1261_p13 = pneg %p1260_p12 }
  0x21   : > { %190 = vadd.xlane.f32.xlu1 %v189_v6  ;;  %184 = vadd.xlane.f32.xlu0 %v183_v7  ;;  %v222_v31 = vsel %vm179_vm0, %v161_v29, 0.0  ;;  %v231_v34 = vsel %vm179_vm0, %v164_v32, 0.0  ;;  %v228_v35 = vsel %vm179_vm0, %v163_v33, 0.0  ;;  %v166_v36 = vld [vmem:[%s1391_s25 + $0x98] sm:$0xff]  ;;  %v165_v37 = vld [vmem:[%s1391_s25 + $0x90] sm:$0xff]  ;;  %v168_v40 = vld [vmem:[%s1391_s25 + $0xa8] sm:$0xff] }
  0x22   : > { %v237_v38 = vsel %vm179_vm0, %v166_v36, 0.0  ;;  %v234_v39 = vsel %vm179_vm0, %v165_v37, 0.0  ;;  %v167_v41 = vld [vmem:[%s1391_s25 + $0xa0] sm:$0xff]  ;;  %v243_v42 = vsel %vm179_vm0, %v168_v40, 0.0  ;;  %v170_v44 = vld [vmem:[%s1391_s25 + $0xb8] sm:$0xff]  ;;  %v169_v45 = vld [vmem:[%s1391_s25 + $0xb0] sm:$0xff] }
  0x23   : > { %v240_v43 = vsel %vm179_vm0, %v167_v41, 0.0  ;;  %v249_v46 = vsel %vm179_vm0, %v170_v44, 0.0  ;;  %v246_v47 = vsel %vm179_vm0, %v169_v45, 0.0  ;;  %v172_v48 = vld [vmem:[%s1391_s25 + $0xc8] sm:$0xff]  ;;  %v171_v49 = vld [vmem:[%s1391_s25 + $0xc0] sm:$0xff]  ;;  %v174_v52 = vld [vmem:[%s1391_s25 + $0xd8] sm:$0xff] }
  0x24   : > { %v255_v50 = vsel %vm179_vm0, %v172_v48, 0.0  ;;  %v252_v51 = vsel %vm179_vm0, %v171_v49, 0.0  ;;  %v173_v53 = vld [vmem:[%s1391_s25 + $0xd0] sm:$0xff]  ;;  %v261_v54 = vsel %vm179_vm0, %v174_v52, 0.0  ;;  %v176_v56 = vld [vmem:[%s1391_s25 + $0xe8] sm:$0xff]  ;;  %v175_v57 = vld [vmem:[%s1391_s25 + $0xe0] sm:$0xff] }
  0x25   : > { %196 = vadd.xlane.f32.xlu1 %v195_v10  ;;  %193 = vadd.xlane.f32.xlu0 %v192_v11  ;;  %v258_v55 = vsel %vm179_vm0, %v173_v53, 0.0  ;;  %v267_v58 = vsel %vm179_vm0, %v176_v56, 0.0  ;;  %v264_v59 = vsel %vm179_vm0, %v175_v57, 0.0  ;;  %v178_v60 = vld [vmem:[%s1391_s25 + $0xf8] sm:$0xff]  ;;  %v177_v61 = vld [vmem:[%s1391_s25 + $0xf0] sm:$0xff]  ;;  %v1322_v1 = vmov 0  }
  0x26   : > { %v273_v62 = vsel %vm179_vm0, %v178_v60, 0.0  ;;  %v270_v63 = vsel %vm179_vm0, %v177_v61, 0.0  ;;  %v1207_v0 = vld [vmem:[%s2025_s1] ss:$0 sm:$0xff]  ;;  %1255 = vset.pattern.permute.xlu1 %v1322_v1  ;;  %v1208_v2 = vld [vmem:[%s2025_s1 + $0x1] ss:$0 sm:$0xff]  ;;  %1254 = vset.pattern.permute.xlu0 %v1322_v1 }
  0x27   : > { %s1262_s21 = sshll.u32 %s1323_s17, 4  ;;  %s1263_s21 = int_to_ptr.vmem [resolvable:$false] %s1262_s21 }
  0x28   : > { %s1264_s22 = scalar_lea.vmem %s1263_s21, 256  ;;  %p1265_p0 = scmp.lt.s32.totalorder %s1980_s6, %s1263_s21 }
  0x29   : > { %202 = vadd.xlane.f32.xlu1 %v201_v14  ;;  %199 = vadd.xlane.f32.xlu0 %v198_v15  ;;  %p1266_p1 = scmp.lt.s32.totalorder %s1264_s22, %s1258_s16 }
  0x2b   : > { %p1267_p2 = por %p1266_p1, %p1265_p0 }
  0x2d   : > { %208 = vadd.xlane.f32.xlu1 %v207_v18  ;;  %205 = vadd.xlane.f32.xlu0 %v204_v19  ;;  %p1268_p3 = pnand %p1267_p2, %p1261_p13 }
  0x31   : > { %214 = vadd.xlane.f32.xlu1 %v213_v22  ;;  %211 = vadd.xlane.f32.xlu0 %v210_v23 }
  0x35   : > { %220 = vadd.xlane.f32.xlu1 %v219_v26  ;;  %217 = vadd.xlane.f32.xlu0 %v216_v27 }
  0x39   : > { %226 = vadd.xlane.f32.xlu1 %v225_v30  ;;  %223 = vadd.xlane.f32.xlu0 %v222_v31 }
  0x3d   : > { %232 = vadd.xlane.f32.xlu1 %v231_v34  ;;  %229 = vadd.xlane.f32.xlu0 %v228_v35 }
  0x41   : > { %238 = vadd.xlane.f32.xlu1 %v237_v38  ;;  %235 = vadd.xlane.f32.xlu0 %v234_v39 }
  0x45   : > { %244 = vadd.xlane.f32.xlu1 %v243_v42  ;;  %241 = vadd.xlane.f32.xlu0 %v240_v43 }
  0x49   : > { %250 = vadd.xlane.f32.xlu1 %v249_v46  ;;  %247 = vadd.xlane.f32.xlu0 %v246_v47 }
  0x4d   : > { %256 = vadd.xlane.f32.xlu1 %v255_v50  ;;  %253 = vadd.xlane.f32.xlu0 %v252_v51 }
  0x51   : > { %262 = vadd.xlane.f32.xlu1 %v261_v54  ;;  %259 = vadd.xlane.f32.xlu0 %v258_v55 }
  0x55   : > { %268 = vadd.xlane.f32.xlu1 %v267_v58  ;;  %265 = vadd.xlane.f32.xlu0 %v264_v59 }
  0x59   : > { %274 = vadd.xlane.f32.xlu1 %v273_v62  ;;  %271 = vadd.xlane.f32.xlu0 %v270_v63 }
  0x6a   : > { %321 = vbcast.lane.b32.xlu1 %v1207_v0, 264 }
  0x6e   : > { %325 = vbcast.lane.b32.xlu1 %v1207_v0, 272 }
  0x6f   : > { %317 = vbcast.lane.b32.xlu0 %v1207_v0, 256 }
  0x72   : > { %329 = vbcast.lane.b32.xlu1 %v1207_v0, 280 }
  0x73   : > { %373 = vbcast.lane.b32.xlu0 %v1208_v2, 256 }
  0x76   : > { %377 = vbcast.lane.b32.xlu1 %v1208_v2, 264 }
  0x77   : > { %381 = vbcast.lane.b32.xlu0 %v1208_v2, 272 }
  0x7a   : > { %385 = vbcast.lane.b32.xlu1 %v1208_v2, 280 }
  0xaa   : > { %v188_v3 = vpop.xlane.xlu1 %187  ;;  %v182_v4 = vpop.xlane.xlu0 %181 }
  0xab   : > { %v277_v37 = vmul.f32 0.0625, %v182_v4  ;;  %v279_v47 = vmul.f32 0.0625, %v188_v3 }
  0xae   : > { %v191_v5 = vpop.xlane.xlu1 %190  ;;  %v185_v6 = vpop.xlane.xlu0 %184 }
  0xaf   : > { %v278_v46 = vmul.f32 0.0625, %v185_v6  ;;  %v280_v51 = vmul.f32 0.0625, %v191_v5 }
  0xb2   : > { %v197_v7 = vpop.xlane.xlu1 %196  ;;  %v194_v8 = vpop.xlane.xlu0 %193 }
  0xb3   : > { %v282_v54 = vmul.f32 0.0625, %v197_v7  ;;  %v281_v55 = vmul.f32 0.0625, %v194_v8 }
  0xb6   : > { %v203_v9 = vpop.xlane.xlu1 %202  ;;  %v200_v10 = vpop.xlane.xlu0 %199 }
  0xb7   : > { %v284_v63 = vmul.f32 0.0625, %v203_v9  ;;  %v283_v0 = vmul.f32 0.0625, %v200_v10 }
  0xba   : > { %v1463_v11 = vpop.xlane.xlu1 %208  ;;  %v1465_v12 = vpop.xlane.xlu0 %205 }
  0xbb   : > { %v286_v8 = vmul.f32 0.0625, %v1463_v11  ;;  %v285_v9 = vmul.f32 0.0625, %v1465_v12 }
  0xbe   : > { %v1467_v13 = vpop.xlane.xlu1 %214  ;;  %v1469_v14 = vpop.xlane.xlu0 %211 }
  0xc2   : > { %v1471_v15 = vpop.xlane.xlu1 %220  ;;  %v1473_v16 = vpop.xlane.xlu0 %217 }
  0xc6   : > { %v1475_v17 = vpop.xlane.xlu1 %226  ;;  %v1477_v18 = vpop.xlane.xlu0 %223 }
  0xca   : > { %v1479_v19 = vpop.xlane.xlu1 %232  ;;  %v1481_v20 = vpop.xlane.xlu0 %229 }
  0xce   : > { %v1483_v21 = vpop.xlane.xlu1 %238  ;;  %v1485_v22 = vpop.xlane.xlu0 %235 }
  0xd2   : > { %v1487_v23 = vpop.xlane.xlu1 %244  ;;  %v1489_v24 = vpop.xlane.xlu0 %241 }
  0xd6   : > { %v1491_v25 = vpop.xlane.xlu1 %250  ;;  %v1493_v26 = vpop.xlane.xlu0 %247 }
  0xda   : > { %v1495_v27 = vpop.xlane.xlu1 %256  ;;  %v1497_v28 = vpop.xlane.xlu0 %253 }
  0xde   : > { %v1499_v29 = vpop.xlane.xlu1 %262  ;;  %v1501_v30 = vpop.xlane.xlu0 %259 }
  0xe2   : > { %v269_v31 = vpop.xlane.xlu1 %268  ;;  %v1503_v32 = vpop.xlane.xlu0 %265 }
  0xe3   : > { %v306_v38 = vmul.f32 0.0625, %v269_v31 }
  0xe6   : > { %v1505_v33 = vpop.xlane.xlu1 %274  ;;  %v272_v34 = vpop.xlane.xlu0 %271 }
  0xe7   : > { %v307_v1 = vmul.f32 0.0625, %v272_v34 }
  0xea   : > { %v1507_v35 = vpop.permute.xlu1 %321  ;;  %v1509_v36 = vpop.permute.xlu0 %317 }
  0xeb   : > { %v335_v39 = vmul.f32 %v1509_v36, %v277_v37  ;;  %v1517_v42 = vmul.f32 %v1507_v35, %v306_v38  ;;  %v336_v48 = vmul.f32 %v1507_v35, %v278_v46  ;;  %v340_v61 = vmul.f32 %v1507_v35, %v282_v54 }
  0xec   : > { %v339_v62 = vmul.f32 %v1509_v36, %v281_v55  ;;  %v344_v11 = vmul.f32 %v1507_v35, %v286_v8  ;;  %v343_v12 = vmul.f32 %v1509_v36, %v285_v9  ;;  %v289_v54 = vmul.f32 0.0625, %v1473_v16 }
  0xed   : > { %v291_v16 = vmul.f32 0.0625, %v1477_v18 }
  0xee   : > { %v1512_v40 = vpop.permute.xlu1 %325  ;;  %v1514_v41 = vpop.permute.xlu0 %373 }
  0xef   : > { %v1520_v43 = vadd.f32 %v1514_v41, %v335_v39  ;;  %v337_v53 = vmul.f32 %v1512_v40, %v279_v47  ;;  %v1556_v5 = vadd.f32 %v1514_v41, %v339_v62  ;;  %v341_v7 = vmul.f32 %v1512_v40, %v283_v0 }
  0xf0   : > { %v1563_v10 = vmul.f32 %v1512_v40, %v307_v1  ;;  %v288_v39 = vmul.f32 0.0625, %v1467_v13  ;;  %v349_v18 = vmul.f32 %v1512_v40, %v291_v16 }
  0xf1   : > { %v423_v44 = vmul.f32 %v1520_v43, %v1520_v43  ;;  %v427_v34 = vmul.f32 %v1556_v5, %v1556_v5 }
  0xf2   : > { %v1524_v45 = vpop.permute.xlu1 %329  ;;  %v1527_v49 = vpop.permute.xlu0 %381 }
  0xf3   : > { %488 = vperm.xlu0 %1254, %v423_v44   ;;  %v338_v57 = vmul.f32 %v1524_v45, %v280_v51  ;;  %v1539_v58 = vadd.f32 %v1527_v49, %v337_v53  ;;  %v342_v6 = vmul.f32 %v1524_v45, %v284_v63  ;;  %v1573_v38 = vadd.f32 %v1527_v49, %v341_v7 }
  0xf4   : > { %v287_v44 = vmul.f32 0.0625, %v1469_v14  ;;  %v1587_v51 = vadd.f32 %v1514_v41, %v343_v12  ;;  %v346_v53 = vmul.f32 %v1524_v45, %v288_v39  ;;  %v290_v14 = vmul.f32 0.0625, %v1471_v15 }
  0xf5   : > { %v425_v3 = vmul.f32 %v1539_v58, %v1539_v58  ;;  %v429_v47 = vmul.f32 %v1573_v38, %v1573_v38  ;;  %v347_v15 = vmul.f32 %v1509_v36, %v289_v54  ;;  %v293_v63 = vmul.f32 0.0625, %v1481_v20 }
  0xf6   : > { %v1529_v50 = vpop.permute.xlu1 %377  ;;  %v345_v13 = vmul.f32 %v1512_v40, %v287_v44  ;;  %v348_v62 = vmul.f32 %v1507_v35, %v290_v14  ;;  %v292_v20 = vmul.f32 0.0625, %v1475_v17  ;;  %v294_v7 = vmul.f32 0.0625, %v1479_v19 }
  0xf7   : > { %v1532_v52 = vadd.f32 %v1529_v50, %v336_v48  ;;  %v1553_v4 = vadd.f32 %v1529_v50, %v340_v61  ;;  %v1584_v48 = vadd.f32 %v1529_v50, %v344_v11  ;;  %v295_v19 = vmul.f32 0.0625, %v1485_v22 }
  0xf8   : > { %v1601_v61 = vadd.f32 %v1527_v49, %v345_v13  ;;  %v350_v11 = vmul.f32 %v1524_v45, %v292_v20  ;;  %v352_v17 = vmul.f32 %v1507_v35, %v294_v7  ;;  %v297_v12 = vmul.f32 0.0625, %v1489_v24 }
  0xf9   : > { %v424_v56 = vmul.f32 %v1532_v52, %v1532_v52  ;;  %v428_v31 = vmul.f32 %v1553_v4, %v1553_v4  ;;  %v432_v55 = vmul.f32 %v1584_v48, %v1584_v48  ;;  %v353_v22 = vmul.f32 %v1512_v40, %v295_v19 }
  0xfa   : > { %v1541_v59 = vpop.permute.xlu1 %385  ;;  %v433_v1 = vmul.f32 %v1601_v61, %v1601_v61  ;;  %v296_v24 = vmul.f32 0.0625, %v1483_v21  ;;  %v298_v13 = vmul.f32 0.0625, %v1487_v23  ;;  %v299_v23 = vmul.f32 0.0625, %v1493_v26 }
  0xfb   : > { %491 = vperm.xlu1 %1255, %v424_v56   ;;  %v1544_v60 = vadd.f32 %v1541_v59, %v338_v57  ;;  %v1570_v37 = vadd.f32 %v1541_v59, %v342_v6  ;;  %v431_v56 = vmul.f32 %v1587_v51, %v1587_v51  ;;  %v1598_v57 = vadd.f32 %v1541_v59, %v346_v53 }
  0xfc   : > { %v351_v6 = vmul.f32 %v1509_v36, %v293_v63  ;;  %v355_v53 = vmul.f32 %v1509_v36, %v297_v12  ;;  %v356_v21 = vmul.f32 %v1507_v35, %v298_v13  ;;  %v357_v26 = vmul.f32 %v1512_v40, %v299_v23 }
  0xfd   : > { %v426_v2 = vmul.f32 %v1544_v60, %v1544_v60  ;;  %v430_v46 = vmul.f32 %v1570_v37, %v1570_v37  ;;  %v434_v0 = vmul.f32 %v1598_v57, %v1598_v57  ;;  %v305_v20 = vmul.f32 0.0625, %v1503_v32 }
  0xfe   : > { %v303_v32 = vmul.f32 0.0625, %v1501_v30  ;;  %v304_v30 = vmul.f32 0.0625, %v1499_v29 }
  0xff   : > { %497 = vperm.xlu0 %1254, %v426_v2   ;;  %494 = vperm.xlu1 %1255, %v425_v3   ;;  %v1612_v2 = vadd.f32 %v1529_v50, %v348_v62  ;;  %v1615_v3 = vadd.f32 %v1514_v41, %v347_v15  ;;  %v354_v62 = vmul.f32 %v1524_v45, %v296_v24  ;;  %v301_v15 = vmul.f32 0.0625, %v1497_v28 }
 0x100   : > { %v300_v28 = vmul.f32 0.0625, %v1491_v25  ;;  %v362_v13 = vmul.f32 %v1524_v45, %v304_v30 }
 0x101   : > { %v436_v8 = vmul.f32 %v1612_v2, %v1612_v2  ;;  %v435_v9 = vmul.f32 %v1615_v3, %v1615_v3 }
 0x102   : > { %v358_v25 = vmul.f32 %v1524_v45, %v300_v28 }
 0x103   : > { %503 = vperm.xlu0 %1254, %v428_v31   ;;  %500 = vperm.xlu1 %1255, %v427_v34   ;;  %v1626_v31 = vadd.f32 %v1514_v41, %v351_v6  ;;  %v1629_v34 = vadd.f32 %v1527_v49, %v349_v18  ;;  %v359_v6 = vmul.f32 %v1509_v36, %v301_v15  ;;  %v302_v18 = vmul.f32 0.0625, %v1495_v27 }
 0x104   : > { %v1737_v15 = vadd.f32 %v1527_v49, %v1563_v10 }
 0x105   : > { %v439_v39 = vmul.f32 %v1626_v31, %v1626_v31  ;;  %v437_v44 = vmul.f32 %v1629_v34, %v1629_v34  ;;  %v360_v27 = vmul.f32 %v1507_v35, %v302_v18  ;;  %v361_v35 = vmul.f32 %v1512_v40, %v303_v32 }
 0x106   : > { %v308_v40 = vmul.f32 0.0625, %v1505_v33  ;;  %2044 = vst [vmem:[#allocation12_spill] sm:$0xff] %v1737_v15 }
 0x107   : > { %509 = vperm.xlu0 %1254, %v430_v46   ;;  %506 = vperm.xlu1 %1255, %v429_v47   ;;  %v1640_v46 = vadd.f32 %v1541_v59, %v350_v11  ;;  %v1643_v47 = vadd.f32 %v1529_v50, %v352_v17  ;;  %v1686_v11 = vadd.f32 %v1527_v49, %v357_v26 }
 0x108   : > { %v363_v17 = vmul.f32 %v1509_v36, %v305_v20  ;;  %v1712_v24 = vadd.f32 %v1527_v49, %v361_v35 }
 0x109   : > { %2037 = vst [vmem:[#allocation5_spill] sm:$0xff] %v1643_v47  ;;  %v438_v14 = vmul.f32 %v1640_v46, %v1640_v46  ;;  %v440_v54 = vmul.f32 %v1643_v47, %v1643_v47  ;;  %2040 = vst [vmem:[#allocation8_spill] sm:$0xff] %v1686_v11  ;;  %v445_v12 = vmul.f32 %v1686_v11, %v1686_v11 }
 0x10a   : > { %2042 = vst [vmem:[#allocation10_spill] sm:$0xff] %v1712_v24 }
 0x10b   : > { %515 = vperm.xlu0 %1254, %v432_v55   ;;  %512 = vperm.xlu1 %1255, %v431_v56   ;;  %v1654_v55 = vadd.f32 %v1514_v41, %v355_v53  ;;  %v1657_v56 = vadd.f32 %v1527_v49, %v353_v22  ;;  %v1709_v22 = vadd.f32 %v1514_v41, %v363_v17  ;;  %v583_v17 = vlaneseq }
 0x10d   : > { %2038 = vst [vmem:[#allocation6_spill] sm:$0xff] %v1657_v56  ;;  %v443_v16 = vmul.f32 %v1654_v55, %v1654_v55  ;;  %v441_v63 = vmul.f32 %v1657_v56, %v1657_v56  ;;  %v451_v29 = vmul.f32 %v1709_v22, %v1709_v22  ;;  %v584_v35 = vand.u32 127, %v583_v17 }
 0x10f   : > { %521 = vperm.xlu0 %1254, %v434_v0   ;;  %518 = vperm.xlu1 %1255, %v433_v1   ;;  %v1668_v0 = vadd.f32 %v1541_v59, %v354_v62  ;;  %v1671_v1 = vadd.f32 %v1529_v50, %v356_v21  ;;  %v366_v62 = vmul.f32 %v1524_v45, %v308_v40  ;;  %v1761_v40 = vshrl.u32 %v583_v17, 7 }
 0x110   : > { %v453_v45 = vmul.f32 %v1737_v15, %v1737_v15 }
 0x111   : > { %2039 = vst [vmem:[#allocation7_spill] sm:$0xff] %v1671_v1  ;;  %v442_v7 = vmul.f32 %v1668_v0, %v1668_v0  ;;  %v1733_v23 = vadd.f32 %v1541_v59, %v366_v62 }
 0x113   : > { %527 = vperm.xlu0 %1254, %v436_v8   ;;  %524 = vperm.xlu1 %1255, %v435_v9   ;;  %v444_v8 = vmul.f32 %v1671_v1, %v1671_v1  ;;  %v1683_v9 = vadd.f32 %v1514_v41, %v359_v6  ;;  %v1725_v41 = vadd.f32 %v1529_v50, %v1517_v42 }
 0x114   : > { %v454_v42 = vmul.f32 %v1733_v23, %v1733_v23 }
 0x115   : > { %v447_v19 = vmul.f32 %v1683_v9, %v1683_v9  ;;  %2043 = vst [vmem:[#allocation11_spill] sm:$0xff] %v1725_v41  ;;  %v452_v21 = vmul.f32 %v1725_v41, %v1725_v41 }
 0x117   : > { %536 = vperm.xlu0 %1254, %v439_v39   ;;  %530 = vperm.xlu1 %1255, %v437_v44   ;;  %v1697_v39 = vadd.f32 %v1541_v59, %v358_v25  ;;  %v1700_v44 = vadd.f32 %v1529_v50, %v360_v27 }
 0x119   : > { %2041 = vst [vmem:[#allocation9_spill] sm:$0xff] %v1700_v44  ;;  %v446_v36 = vmul.f32 %v1697_v39, %v1697_v39  ;;  %v448_v53 = vmul.f32 %v1700_v44, %v1700_v44 }
 0x11b   : > { %533 = vperm.xlu0 %1254, %v438_v14   ;;  %539 = vperm.xlu1 %1255, %v440_v54   ;;  %v449_v14 = vmul.f32 %v1712_v24, %v1712_v24  ;;  %v1721_v54 = vadd.f32 %v1541_v59, %v362_v13  ;;  %v596_v13 = vadd.s32 4294967280, %v584_v35 }
 0x11d   : > { %v450_v33 = vmul.f32 %v1721_v54, %v1721_v54 }
 0x11f   : > { %548 = vperm.xlu0 %1254, %v443_v16   ;;  %542 = vperm.xlu1 %1255, %v441_v63  }
 0x123   : > { %545 = vperm.xlu0 %1254, %v442_v7   ;;  %551 = vperm.xlu1 %1255, %v444_v8  }
 0x127   : > { %560 = vperm.xlu0 %1254, %v447_v19   ;;  %554 = vperm.xlu1 %1255, %v445_v12  }
 0x12b   : > { %557 = vperm.xlu0 %1254, %v446_v36   ;;  %563 = vperm.xlu1 %1255, %v448_v53   ;;  %v589_v53 = vadd.s32 4294967288, %v584_v35 }
 0x12d   : > { %v1768_v62 = vsub.s32 %v589_v53, %v1761_v40 }
 0x12f   : > { %572 = vperm.xlu0 %1254, %v451_v29   ;;  %566 = vperm.xlu1 %1255, %v449_v14  }
 0x133   : > { %569 = vperm.xlu0 %1254, %v450_v33   ;;  %575 = vperm.xlu1 %1255, %v452_v21   ;;  %v603_v33 = vadd.s32 4294967272, %v584_v35  ;;  %v1771_v21 = vsub.s32 %v596_v13, %v1761_v40 }
 0x135   : > { %v1782_v41 = vsub.s32 %v603_v33, %v1761_v40 }
 0x137   : > { %581 = vperm.xlu0 %1254, %v454_v42   ;;  %578 = vperm.xlu1 %1255, %v453_v45   ;;  %v1774_v42 = vsub.s32 %v584_v35, %v1761_v40 }
 0x172   : > { %v489_v50 = vpop.permute.xlu0 %488 }
 0x173   : > { %v588_v1 = vrot.slane %v489_v50, %v1774_v42 }
 0x17a   : > { %v492_v16 = vpop.permute.xlu1 %491 }
 0x17b   : > { %v593_v17 = vrot.slane %v492_v16, %v1768_v62 }
 0x17e   : > { %v495_v63 = vpop.permute.xlu1 %494  ;;  %v1743_v6 = vpop.permute.xlu0 %497 }
 0x17f   : > { %v600_v13 = vrot.slane %v495_v63, %v1771_v21 }
 0x182   : > { %v501_v59 = vpop.permute.xlu1 %500  ;;  %v504_v26 = vpop.permute.xlu0 %503 }
 0x183   : > { %v613_v53 = vrot.slane %v501_v59, %v1774_v42  ;;  %v617_v24 = vrot.slane %v504_v26, %v1768_v62  ;;  %v595_v59 = vsel %vm594_vm1, %v593_v17, %v588_v1  ;;  %v607_v26 = vrot.slane %v1743_v6, %v1782_v41 }
 0x185   : > { %v618_v63 = vsel %vm594_vm1, %v617_v24, %v613_v53 }
 0x186   : > { %v507_v28 = vpop.permute.xlu1 %506  ;;  %v510_v49 = vpop.permute.xlu0 %509 }
 0x187   : > { %v622_v44 = vrot.slane %v507_v28, %v1771_v21  ;;  %v627_v28 = vrot.slane %v510_v49, %v1782_v41 }
 0x18a   : > { %v513_v10 = vpop.permute.xlu1 %512  ;;  %v516_v18 = vpop.permute.xlu0 %515 }
 0x18b   : > { %v632_v35 = vrot.slane %v513_v10, %v1774_v42  ;;  %v636_v11 = vrot.slane %v516_v18, %v1768_v62  ;;  %v602_v10 = vsel %vm601_vm2, %v600_v13, %v595_v59  ;;  %v623_v18 = vsel %vm601_vm2, %v622_v44, %v618_v63 }
 0x18c   : > { %v609_v44 = vsel %vm608_vm3, %v607_v26, %v602_v10 }
 0x18d   : > { %v637_v50 = vsel %vm594_vm1, %v636_v11, %v632_v35  ;;  %v628_v11 = vsel %vm608_vm3, %v627_v28, %v623_v18 }
 0x18e   : > { %v519_v20 = vpop.permute.xlu1 %518  ;;  %v522_v7 = vpop.permute.xlu0 %521  ;;  %v744_v10 = vsel %vm743_vm4, %v628_v11, %v609_v44 }
 0x18f   : > { %v641_v16 = vrot.slane %v519_v20, %v1771_v21  ;;  %v646_v20 = vrot.slane %v522_v7, %v1782_v41 }
 0x191   : > { %v642_v47 = vsel %vm601_vm2, %v641_v16, %v637_v50 }
 0x192   : > { %v1745_v8 = vpop.permute.xlu1 %524  ;;  %v1747_v25 = vpop.permute.xlu0 %527 }
 0x193   : > { %v651_v1 = vrot.slane %v1745_v8, %v1774_v42  ;;  %v655_v24 = vrot.slane %v1747_v25, %v1768_v62  ;;  %v647_v8 = vsel %vm608_vm3, %v646_v20, %v642_v47 }
 0x195   : > { %v656_v16 = vsel %vm594_vm1, %v655_v24, %v651_v1 }
 0x196   : > { %v1749_v27 = vpop.permute.xlu1 %530  ;;  %v1751_v32 = vpop.permute.xlu0 %536 }
 0x197   : > { %v660_v7 = vrot.slane %v1749_v27, %v1771_v21  ;;  %v670_v35 = vrot.slane %v1751_v32, %v1774_v42 }
 0x199   : > { %v661_v32 = vsel %vm601_vm2, %v660_v7, %v656_v16 }
 0x19a   : > { %v1753_v19 = vpop.permute.xlu1 %539  ;;  %v1755_v12 = vpop.permute.xlu0 %533 }
 0x19b   : > { %v674_v17 = vrot.slane %v1753_v19, %v1768_v62  ;;  %v665_v25 = vrot.slane %v1755_v12, %v1782_v41 }
 0x19d   : > { %v666_v63 = vsel %vm608_vm3, %v665_v25, %v661_v32 }
 0x19e   : > { %v1757_v30 = vpop.permute.xlu1 %542  ;;  %v1759_v36 = vpop.permute.xlu0 %548 }
 0x19f   : > { %v679_v53 = vrot.slane %v1757_v30, %v1771_v21  ;;  %v689_v12 = vrot.slane %v1759_v36, %v1774_v42 }
 0x1a2   : > { %v1763_v29 = vpop.permute.xlu1 %551  ;;  %v1765_v14 = vpop.permute.xlu0 %545 }
 0x1a3   : > { %v693_v13 = vrot.slane %v1763_v29, %v1768_v62  ;;  %v684_v27 = vrot.slane %v1765_v14, %v1782_v41  ;;  %v675_v14 = vsel %vm594_vm1, %v674_v17, %v670_v35 }
 0x1a4   : > { %v680_v28 = vsel %vm601_vm2, %v679_v53, %v675_v14 }
 0x1a5   : > { %v694_v36 = vsel %vm594_vm1, %v693_v13, %v689_v12  ;;  %v685_v18 = vsel %vm608_vm3, %v684_v27, %v680_v28 }
 0x1a6   : > { %v1776_v45 = vpop.permute.xlu1 %554  ;;  %v1778_v15 = vpop.permute.xlu0 %560 }
 0x1a7   : > { %v698_v19 = vrot.slane %v1776_v45, %v1771_v21  ;;  %v708_v45 = vrot.slane %v1778_v15, %v1774_v42  ;;  %v746_v15 = vsel %vm745_vm5, %v647_v8, %v744_v10 }
 0x1a8   : > { %v748_v25 = vsel %vm747_vm6, %v666_v63, %v746_v15 }
 0x1a9   : > { %v699_v50 = vsel %vm601_vm2, %v698_v19, %v694_v36  ;;  %v750_v13 = vsel %vm749_vm7, %v685_v18, %v748_v25  ;;  %v779_v36 = vsub.s32 3, %v1761_v40 }
 0x1aa   : > { %v564_v33 = vpop.permute.xlu1 %563  ;;  %v558_v56 = vpop.permute.xlu0 %557 }
 0x1ab   : > { %v712_v47 = vrot.slane %v564_v33, %v1768_v62  ;;  %v703_v30 = vrot.slane %v558_v56, %v1782_v41 }
 0x1ad   : > { %v713_v20 = vsel %vm594_vm1, %v712_v47, %v708_v45  ;;  %v704_v1 = vsel %vm608_vm3, %v703_v30, %v699_v50  ;;  %v787_v50 = vsub.s32 5, %v1761_v40 }
 0x1ae   : > { %v567_v6 = vpop.permute.xlu1 %566  ;;  %v573_v49 = vpop.permute.xlu0 %572  ;;  %v752_v27 = vsel %vm751_vm8, %v704_v1, %v750_v13 }
 0x1af   : > { %v717_v29 = vrot.slane %v567_v6, %v1771_v21  ;;  %v727_v6 = vrot.slane %v573_v49, %v1774_v42 }
 0x1b1   : > { %v718_v24 = vsel %vm601_vm2, %v717_v29, %v713_v20  ;;  %v775_v29 = vsub.s32 2, %v1761_v40 }
 0x1b2   : > { %v576_v59 = vpop.permute.xlu1 %575  ;;  %v570_v26 = vpop.permute.xlu0 %569 }
 0x1b3   : > { %v722_v33 = vrot.slane %v570_v26, %v1782_v41  ;;  %v731_v56 = vrot.slane %v576_v59, %v1768_v62  ;;  %v767_v59 = vsub.s32 0, %v1761_v40  ;;  %v783_v26 = vsub.s32 4, %v1761_v40 }
 0x1b5   : > { %v723_v44 = vsel %vm608_vm3, %v722_v33, %v718_v24  ;;  %v732_v8 = vsel %vm594_vm1, %v731_v56, %v727_v6 }
 0x1b6   : > { %v579_v7 = vpop.permute.xlu1 %578  ;;  %v582_v17 = vpop.permute.xlu0 %581  ;;  %v754_v19 = vsel %vm753_vm9, %v723_v44, %v752_v27 }
 0x1b7   : > { %v736_v11 = vrot.slane %v579_v7, %v1771_v21  ;;  %v741_v53 = vrot.slane %v582_v17, %v1782_v41 }
 0x1b9   : > { %v737_v35 = vsel %vm601_vm2, %v736_v11, %v732_v8 }
 0x1ba   : > { %v742_v49 = vsel %vm608_vm3, %v741_v53, %v737_v35 }
 0x1bb   : > { %v756_v47 = vsel %vm755_vm10, %v742_v49, %v754_v19  ;;  %v2052_v19 = vld [vmem:[#allocation12_spill] sm:$0xff] }
 0x1bc   : > { %v759_v16 = vsel %vm758_vm11, %v756_v47, 0.0 }
 0x1bd   : > { %760 = vadd.xlane.f32.xlu1 %v759_v16 }
 0x24a   : > { %v761_v12 = vpop.xlane.xlu1 %760 }
 0x24b   : > { %v762_v30 = vmax.f32 %v761_v12, 1e-24 }
 0x24d   : > { %1256 = vrsqrt.f32 %v762_v30 }
 0x257   : > { %v1257_v32 = vpop.eup %1256 }
 0x258   : > { %v776_v14 = vrot.slane %v1257_v32, %v775_v29  ;;  %v768_v45 = vrot.slane %v1257_v32, %v767_v59  ;;  %v784_v28 = vrot.slane %v1257_v32, %v783_v26  ;;  %v780_v18 = vrot.slane %v1257_v32, %v779_v36 }
 0x259   : > { %v788_v15 = vrot.slane %v1257_v32, %v787_v50 }
 0x25a   : > { %v814_v33 = vmul.f32 %v776_v14, %v1584_v48  ;;  %v805_v63 = vmul.f32 %v768_v45, %v1520_v43  ;;  %v821_v56 = vmul.f32 %v784_v28, %v1626_v31  ;;  %v806_v10 = vmul.f32 %v768_v45, %v1532_v52 }
 0x25b   : > { %v820_v20 = vmul.f32 %v780_v18, %v1640_v46  ;;  %v807_v48 = vmul.f32 %v768_v45, %v1539_v58  ;;  %v771_v43 = vsub.s32 1, %v1761_v40  ;;  %v825_v1 = vmul.f32 %v788_v15, %v1654_v55 }
 0x25c   : > { %897 = vperm.xlu1 %1255, %v814_v33   ;;  %870 = vperm.xlu0 %1254, %v805_v63   ;;  %v808_v31 = vmul.f32 %v768_v45, %v1544_v60  ;;  %v791_v52 = vsub.s32 6, %v1761_v40  ;;  %v824_v6 = vmul.f32 %v784_v28, %v1668_v0  ;;  %v795_v55 = vsub.s32 7, %v1761_v40 }
 0x25d   : > { %v772_v24 = vrot.slane %v1257_v32, %v771_v43  ;;  %v828_v60 = vmul.f32 %v788_v15, %v1697_v39  ;;  %v815_v39 = vmul.f32 %v776_v14, %v1601_v61  ;;  %v2047_v61 = vld [vmem:[#allocation7_spill] sm:$0xff] }
 0x25e   : > { %v792_v7 = vrot.slane %v1257_v32, %v791_v52  ;;  %v796_v44 = vrot.slane %v1257_v32, %v795_v55  ;;  %v826_v13 = vmul.f32 %v788_v15, %v2047_v61 }
 0x25f   : > { %v809_v46 = vmul.f32 %v772_v24, %v1556_v5  ;;  %v810_v17 = vmul.f32 %v772_v24, %v1553_v4  ;;  %v811_v25 = vmul.f32 %v772_v24, %v1573_v38  ;;  %v812_v0 = vmul.f32 %v772_v24, %v1570_v37 }
 0x260   : > { %918 = vperm.xlu1 %1255, %v821_v56   ;;  %873 = vperm.xlu0 %1254, %v806_v10   ;;  %v829_v58 = vmul.f32 %v792_v7, %v1683_v9  ;;  %v833_v5 = vmul.f32 %v796_v44, %v1709_v22  ;;  %v832_v9 = vmul.f32 %v792_v7, %v1721_v54 }
 0x261   : > { %v813_v4 = vmul.f32 %v776_v14, %v1587_v51  ;;  %v836_v40 = vmul.f32 %v796_v44, %v1733_v23  ;;  %v816_v38 = vmul.f32 %v776_v14, %v1598_v57  ;;  %v817_v22 = vmul.f32 %v780_v18, %v1615_v3  ;;  %v2045_v51 = vld [vmem:[#allocation5_spill] sm:$0xff]  ;;  %v2046_v23 = vld [vmem:[#allocation6_spill] sm:$0xff]  ;;  %v2048_v57 = vld [vmem:[#allocation8_spill] sm:$0xff] }
 0x262   : > { %v818_v37 = vmul.f32 %v780_v18, %v1612_v2  ;;  %v819_v54 = vmul.f32 %v780_v18, %v1629_v34  ;;  %v822_v11 = vmul.f32 %v784_v28, %v2045_v51  ;;  %v823_v53 = vmul.f32 %v784_v28, %v2046_v23  ;;  %v2049_v3 = vld [vmem:[#allocation9_spill] sm:$0xff]  ;;  %v2050_v2 = vld [vmem:[#allocation10_spill] sm:$0xff]  ;;  %v2051_v34 = vld [vmem:[#allocation11_spill] sm:$0xff] }
 0x263   : > { %v827_v8 = vmul.f32 %v788_v15, %v2048_v57  ;;  %v830_v35 = vmul.f32 %v792_v7, %v2049_v3  ;;  %v831_v27 = vmul.f32 %v792_v7, %v2050_v2  ;;  %v834_v49 = vmul.f32 %v796_v44, %v2051_v34 }
 0x264   : > { %915 = vperm.xlu1 %1255, %v820_v20   ;;  %876 = vperm.xlu0 %1254, %v807_v48   ;;  %v835_v47 = vmul.f32 %v796_v44, %v2052_v19 }
 0x268   : > { %930 = vperm.xlu1 %1255, %v825_v1   ;;  %879 = vperm.xlu0 %1254, %v808_v31  }
 0x26c   : > { %927 = vperm.xlu1 %1255, %v824_v6   ;;  %882 = vperm.xlu0 %1254, %v809_v46  }
 0x270   : > { %942 = vperm.xlu1 %1255, %v829_v58   ;;  %885 = vperm.xlu0 %1254, %v810_v17  }
 0x274   : > { %939 = vperm.xlu1 %1255, %v828_v60   ;;  %888 = vperm.xlu0 %1254, %v811_v25  }
 0x278   : > { %954 = vperm.xlu1 %1255, %v833_v5   ;;  %891 = vperm.xlu0 %1254, %v812_v0  }
 0x27c   : > { %951 = vperm.xlu1 %1255, %v832_v9   ;;  %894 = vperm.xlu0 %1254, %v813_v4  }
 0x280   : > { %963 = vperm.xlu1 %1255, %v836_v40   ;;  %900 = vperm.xlu0 %1254, %v815_v39  }
 0x284   : > { %903 = vperm.xlu0 %1254, %v816_v38  }
 0x288   : > { %906 = vperm.xlu0 %1254, %v817_v22  }
 0x28c   : > { %909 = vperm.xlu0 %1254, %v818_v37  }
 0x290   : > { %912 = vperm.xlu0 %1254, %v819_v54  }
 0x294   : > { %921 = vperm.xlu0 %1254, %v822_v11  }
 0x298   : > { %924 = vperm.xlu0 %1254, %v823_v53  }
 0x29c   : > { %933 = vperm.xlu0 %1254, %v826_v13  }
 0x2a0   : > { %936 = vperm.xlu0 %1254, %v827_v8  }
 0x2a4   : > { %945 = vperm.xlu0 %1254, %v830_v35  }
 0x2a8   : > { %948 = vperm.xlu0 %1254, %v831_v27  }
 0x2ac   : > { %957 = vperm.xlu0 %1254, %v834_v49  }
 0x2b0   : > { %960 = vperm.xlu0 %1254, %v835_v47  }
 0x2db   : > { %v871_v16 = vpop.permute.xlu0 %870  ;;  %v898_v18 = vpop.permute.xlu1 %897 }
 0x2dc   : > { %v968_v30 = vrot.slane %v871_v16, %v1774_v42  ;;  %v1010_v5 = vrot.slane %v898_v18, %v1768_v62 }
 0x2df   : > { %v874_v12 = vpop.permute.xlu0 %873  ;;  %v919_v20 = vpop.permute.xlu1 %918 }
 0x2e0   : > { %v972_v29 = vrot.slane %v874_v12, %v1768_v62  ;;  %v1044_v0 = vrot.slane %v919_v20, %v1774_v42 }
 0x2e2   : > { %v973_v59 = vsel %vm594_vm1, %v972_v29, %v968_v30 }
 0x2e3   : > { %v877_v26 = vpop.permute.xlu0 %876  ;;  %v916_v43 = vpop.permute.xlu1 %915 }
 0x2e4   : > { %v977_v32 = vrot.slane %v877_v26, %v1771_v21  ;;  %v1039_v9 = vrot.slane %v916_v43, %v1782_v41 }
 0x2e6   : > { %v978_v14 = vsel %vm601_vm2, %v977_v32, %v973_v59 }
 0x2e7   : > { %v880_v45 = vpop.permute.xlu0 %879  ;;  %v931_v31 = vpop.permute.xlu1 %930 }
 0x2e8   : > { %v982_v33 = vrot.slane %v880_v45, %v1782_v41  ;;  %v1063_v57 = vrot.slane %v931_v31, %v1774_v42 }
 0x2ea   : > { %v1907_v63 = vsel %vm608_vm3, %v982_v33, %v978_v14 }
 0x2eb   : > { %v883_v28 = vpop.permute.xlu0 %882  ;;  %v928_v6 = vpop.permute.xlu1 %927 }
 0x2ec   : > { %v987_v4 = vrot.slane %v883_v28, %v1774_v42  ;;  %v1058_v45 = vrot.slane %v928_v6, %v1782_v41 }
 0x2ef   : > { %v886_v36 = vpop.permute.xlu0 %885  ;;  %v943_v7 = vpop.permute.xlu1 %942 }
 0x2f0   : > { %v991_v40 = vrot.slane %v886_v36, %v1768_v62  ;;  %v1082_v27 = vrot.slane %v943_v7, %v1774_v42 }
 0x2f2   : > { %v992_v34 = vsel %vm594_vm1, %v991_v40, %v987_v4 }
 0x2f3   : > { %v889_v56 = vpop.permute.xlu0 %888  ;;  %v940_v55 = vpop.permute.xlu1 %939 }
 0x2f4   : > { %v996_v39 = vrot.slane %v889_v56, %v1771_v21  ;;  %v1077_v56 = vrot.slane %v940_v55, %v1782_v41 }
 0x2f6   : > { %v997_v47 = vsel %vm601_vm2, %v996_v39, %v992_v34 }
 0x2f7   : > { %v892_v10 = vpop.permute.xlu0 %891  ;;  %v1909_v25 = vpop.permute.xlu1 %954 }
 0x2f8   : > { %v1001_v22 = vrot.slane %v892_v10, %v1782_v41 }
 0x2fa   : > { %v1002_v29 = vsel %vm608_vm3, %v1001_v22, %v997_v47 }
 0x2fb   : > { %v895_v50 = vpop.permute.xlu0 %894  ;;  %v952_v8 = vpop.permute.xlu1 %951  ;;  %v1117_v20 = vsel %vm743_vm4, %v1002_v29, %v1907_v63 }
 0x2fc   : > { %v1006_v37 = vrot.slane %v895_v50, %v1774_v42 }
 0x2fe   : > { %v1011_v16 = vsel %vm594_vm1, %v1010_v5, %v1006_v37 }
 0x2ff   : > { %v901_v48 = vpop.permute.xlu0 %900 }
 0x300   : > { %v1015_v11 = vrot.slane %v901_v48, %v1771_v21  ;;  %v1096_v48 = vrot.slane %v952_v8, %v1782_v41 }
 0x302   : > { %v1016_v59 = vsel %vm601_vm2, %v1015_v11, %v1011_v16 }
 0x303   : > { %v904_v15 = vpop.permute.xlu0 %903 }
 0x304   : > { %v1020_v3 = vrot.slane %v904_v15, %v1782_v41  ;;  %v964_v15 = vpop.permute.xlu1 %963 }
 0x306   : > { %v1021_v33 = vsel %vm608_vm3, %v1020_v3, %v1016_v59 }
 0x307   : > { %v907_v1 = vpop.permute.xlu0 %906  ;;  %v1118_v31 = vsel %vm745_vm5, %v1021_v33, %v1117_v20 }
 0x308   : > { %v1025_v23 = vrot.slane %v907_v1, %v1774_v42  ;;  %v1101_v1 = vrot.slane %v1909_v25, %v1774_v42 }
 0x30b   : > { %v910_v24 = vpop.permute.xlu0 %909 }
 0x30c   : > { %v1029_v38 = vrot.slane %v910_v24, %v1768_v62 }
 0x30e   : > { %v1030_v49 = vsel %vm594_vm1, %v1029_v38, %v1025_v23 }
 0x30f   : > { %v913_v52 = vpop.permute.xlu0 %912 }
 0x310   : > { %v1034_v54 = vrot.slane %v913_v52, %v1771_v21 }
 0x312   : > { %v1035_v12 = vsel %vm601_vm2, %v1034_v54, %v1030_v49 }
 0x313   : > { %v922_v46 = vpop.permute.xlu0 %921  ;;  %v1040_v10 = vsel %vm608_vm3, %v1039_v9, %v1035_v12 }
 0x314   : > { %v1048_v51 = vrot.slane %v922_v46, %v1768_v62  ;;  %v1119_v6 = vsel %vm747_vm6, %v1040_v10, %v1118_v31  ;;  %v1115_v46 = vrot.slane %v964_v15, %v1782_v41 }
 0x316   : > { %v1049_v30 = vsel %vm594_vm1, %v1048_v51, %v1044_v0 }
 0x317   : > { %v925_v58 = vpop.permute.xlu0 %924 }
 0x318   : > { %v1053_v53 = vrot.slane %v925_v58, %v1771_v21 }
 0x31a   : > { %v1054_v26 = vsel %vm601_vm2, %v1053_v53, %v1049_v30 }
 0x31b   : > { %v934_v17 = vpop.permute.xlu0 %933  ;;  %v1059_v43 = vsel %vm608_vm3, %v1058_v45, %v1054_v26 }
 0x31c   : > { %v1067_v61 = vrot.slane %v934_v17, %v1768_v62  ;;  %v1120_v42 = vsel %vm749_vm7, %v1059_v43, %v1119_v6 }
 0x31e   : > { %v1068_v32 = vsel %vm594_vm1, %v1067_v61, %v1063_v57 }
 0x31f   : > { %v937_v60 = vpop.permute.xlu0 %936 }
 0x320   : > { %v1072_v35 = vrot.slane %v937_v60, %v1771_v21 }
 0x322   : > { %v1073_v28 = vsel %vm601_vm2, %v1072_v35, %v1068_v32 }
 0x323   : > { %v946_v44 = vpop.permute.xlu0 %945  ;;  %v1078_v24 = vsel %vm608_vm3, %v1077_v56, %v1073_v28 }
 0x324   : > { %v1086_v2 = vrot.slane %v946_v44, %v1768_v62  ;;  %v1121_v58 = vsel %vm751_vm8, %v1078_v24, %v1120_v42 }
 0x326   : > { %v1087_v36 = vsel %vm594_vm1, %v1086_v2, %v1082_v27 }
 0x327   : > { %v949_v13 = vpop.permute.xlu0 %948 }
 0x328   : > { %v1091_v19 = vrot.slane %v949_v13, %v1771_v21 }
 0x32a   : > { %v1092_v18 = vsel %vm601_vm2, %v1091_v19, %v1087_v36 }
 0x32b   : > { %v958_v14 = vpop.permute.xlu0 %957 }
 0x32c   : > { %v1105_v50 = vrot.slane %v958_v14, %v1768_v62  ;;  %v1097_v62 = vsel %vm608_vm3, %v1096_v48, %v1092_v18 }
 0x32d   : > { %v1122_v60 = vsel %vm753_vm9, %v1097_v62, %v1121_v58 }
 0x32e   : > { %v1106_v7 = vsel %vm594_vm1, %v1105_v50, %v1101_v1 }
 0x32f   : > { %v961_v52 = vpop.permute.xlu0 %960 }
 0x330   : > { %v1110_v63 = vrot.slane %v961_v52, %v1771_v21 }
 0x332   : > { %v1111_v17 = vsel %vm601_vm2, %v1110_v63, %v1106_v7 }
 0x333   : > { %v1116_v55 = vsel %vm608_vm3, %v1115_v46, %v1111_v17 }
 0x334   : > { %v1123_v41 = vsel %vm755_vm10, %v1116_v55, %v1122_v60 }
 0x335   : > { %1125 = vst.msk [vmem:[%s139_s5] sm:$0xff] %vm758_vm11, %v1123_v41 }
 0x336   : > { %1271 = shalt.err (!%p1268_p3)
}
 0x337   : > { %s1272_s23 = scalar_lea.hbm %s1978_s13, 128  ;;  %s1276_s26 = scalar_lea.hbm %s2026_s2, 256 }
 0x338   : > { %p1273_p4 = scmp.ne.s32.totalorder %s1978_s13, %s1272_s23  ;;  %p1277_p9 = scmp.lt.u32.totalorder %s1978_s13, %s2026_s2 }
 0x339   : > { %p1278_p10 = scmp.lt.u32.totalorder %s1276_s26, %s1272_s23  ;;  %p1280_p12 = scmp.lt.u32.totalorder %s1272_s23, %s1978_s13 }
 0x33a   : > { %p1274_p7 = pnand %p1273_p4, %p1377_p5 }
 0x33b   : > { %p1279_p11 = por %p1278_p10, %p1277_p9 }
 0x33c   : > { %p1275_p8 = pneg %p1274_p7 }
 0x33d   : > { %p1281_p13 = por %p1280_p12, %p1279_p11 }
 0x33f   : > { %p1282_p0 = pnand %p1281_p13, %p1275_p8 }
 0x341   : > { %1285 = shalt.err (!%p1282_p0)
}
 0x342   : > { %1214 = dma.vmem_to_hbm [thread:$0]  (%p1377_p5), %s1980_s6, 128, %s1978_s13, %s1127_s14  }
 0x343 PF: > { %p1220_p1 = scmp.ge.s32.totalorder %s1320_s12, 2  ;;  %s1152_s29 = sand.u32 1, %s1308_s9  }
 0x344   : > { %s1153_s30 = scalar_lea.sflag [#allocation3], %s1152_s29 }
 0x345   : > { %p1217_p2 = pnand %p1220_p1, %p1381_p6 }
 0x347   : > { %1303 = dma.done.wait (!%p1217_p2), %s1153_s30, 128  }
 0x348   : > { %1305 = vsyncadd (!%p1217_p2), %s1153_s30, 4294967168  ;;  %p12_p3 = scmp.ge.s32.totalorder %s1364_s15, 4   ;;  %s2053_s9 = smov %s1312_s10 }
 0x349   : > { %s2054_s10 = smov %s1316_s11  ;;  %s2055_s11 = smov %s1375_s18 }
 0x34a   : > { %s2056_s12 = smov %s1364_s15  ;;  %14 = sbr.rel (!%p12_p3) target bundleno = 3 (0x3), region = 63 }
 0x351   :  { %1158 = vsyncpa [#allocation3], 1 }
 0x352   :  { %1160 = vsyncpa [#allocation3 + $0x1], 1 }

</bundles_post_ra>
